<compile_context>
chip_gen: v5e
topology: v5e:2x2
jax: 0.10.0
libtpu: 0.0.40
codegen_flags: <defaults>
</compile_context>

<pallas_src>
import math
from functools import partial

import numpy as np
import jax
import jax.numpy as jnp
from jax.experimental import pallas as pl
from jax.experimental.pallas import tpu as pltpu

F32 = jnp.float32
BF16 = jnp.bfloat16
EPS = 1e-5


# ------------------------------------------------------------------
# tile choosers (no host-side padding: tiles always divide the row count)
# ------------------------------------------------------------------
def _choose_tile(m, cap=512):
    """Largest row tile <= cap, multiple of 8, dividing m; prefer >=2 grid steps."""
    if m <= 8:
        return m
    target = min(cap, m // 2) if m >= 16 else m
    t = max(8, (target // 8) * 8)
    while t >= 8:
        if m % t == 0:
            return t
        t -= 8
    return m  # fallback: one full block (block dims == array dims is allowed)


def _choose_wtile(bw, base, n_tok, cap_rows=512):
    """Window tile: divides both bw and base (mask period), <= cap_rows tokens."""
    cap = max(1, cap_rows // max(1, n_tok))
    target = min(cap, base)
    if bw >= 2:
        target = min(target, max(1, bw // 2))
    tw = max(1, target)
    while tw > 1 and (base % tw != 0 or bw % tw != 0):
        tw -= 1
    return tw


# ------------------------------------------------------------------
# in-kernel math helpers
# ------------------------------------------------------------------
def _erf_approx(x):
    # Abramowitz & Stegun 7.1.26, max abs err ~1.5e-7 (== exact erf in f32).
    # TODO(synk): direct lax.erf lowering in Mosaic not guaranteed -> polynomial.
    a1, a2, a3, a4, a5 = (0.254829592, -0.284496736, 1.421413741,
                          -1.453152027, 1.061405429)
    p = 0.3275911
    ax = jnp.abs(x)
    t = 1.0 / (1.0 + p * ax)
    poly = ((((a5 * t + a4) * t + a3) * t + a2) * t + a1) * t
    y = 1.0 - poly * jnp.exp(-ax * ax)
    return jnp.where(x >= 0, y, -y)


def _gelu(x):
    return 0.5 * x * (1.0 + _erf_approx(x * 0.7071067811865476))


def _ln(x, g, b, eps):
    mu = jnp.mean(x, axis=-1, keepdims=True)
    xc = x - mu
    var = jnp.mean(xc * xc, axis=-1, keepdims=True)
    return xc * jax.lax.rsqrt(var + eps) * g + b


# ------------------------------------------------------------------
# Pallas kernels
# ------------------------------------------------------------------
def _make_ln_linear_kernel(do_ln, has_bias, eps):
    def kernel(*refs):
        idx = 0
        x_ref = refs[idx]; idx += 1
        if do_ln:
            g_ref, be_ref = refs[idx], refs[idx + 1]; idx += 2
        w_ref = refs[idx]; idx += 1
        if has_bias:
            b_ref = refs[idx]; idx += 1
        o_ref = refs[idx]

        x = x_ref[...]
        if do_ln:
            x = _ln(x, g_ref[...], be_ref[...], eps)
        y = jnp.dot(x.astype(BF16), w_ref[...], preferred_element_type=jnp.float32)
        if has_bias:
            y = y + b_ref[...]
        o_ref[...] = y
    return kernel


def pallas_linear(x2d, w, b=None, ln_g=None, ln_b=None, eps=EPS):
    """y = (LN(x) if ln_g else x) @ w (+ b).  x2d: (M,K) f32, w: (K,N)."""
    M, K = x2d.shape
    N = w.shape[1]
    do_ln = ln_g is not None
    has_bias = b is not None
    tile_m = _choose_tile(M)
    grid = pl.cdiv(M, tile_m)

    inputs = [x2d.astype(F32)]
    in_specs = [pl.BlockSpec((tile_m, K), lambda i: (i, 0))]
    if do_ln:
        inputs += [ln_g.reshape(1, K).astype(F32), ln_b.reshape(1, K).astype(F32)]
        in_specs += [pl.BlockSpec((1, K), lambda i: (0, 0)),
                     pl.BlockSpec((1, K), lambda i: (0, 0))]
    inputs.append(w.astype(BF16))
    in_specs.append(pl.BlockSpec((K, N), lambda i: (0, 0)))
    if has_bias:
        inputs.append(b.reshape(1, N).astype(F32))
        in_specs.append(pl.BlockSpec((1, N), lambda i: (0, 0)))

    return pl.pallas_call(
        _make_ln_linear_kernel(do_ln, has_bias, eps),
        out_shape=jax.ShapeDtypeStruct((M, N), F32),
        grid_spec=pl.GridSpec(
            grid=(grid,),
            in_specs=in_specs,
            out_specs=pl.BlockSpec((tile_m, N), lambda i: (i, 0)),
        ),
        compiler_params=pltpu.CompilerParams(dimension_semantics=("parallel",)),
    )(*inputs)


def _mlp_kernel(x_ref, g_ref, be_ref, w1_ref, b1_ref, w2_ref, b2_ref, o_ref, *, eps):
    x = x_ref[...]                                       # (tile, C) f32
    xn = _ln(x, g_ref[...], be_ref[...], eps)
    h = jnp.dot(xn.astype(BF16), w1_ref[...],
                preferred_element_type=jnp.float32) + b1_ref[...]
    h = _gelu(h)
    y = jnp.dot(h.astype(BF16), w2_ref[...],
                preferred_element_type=jnp.float32) + b2_ref[...]
    o_ref[...] = x + y                                   # fused residual


def pallas_mlp(x2d, g, be, w1, b1, w2, b2, eps=EPS):
    """x + fc2(gelu(fc1(LN(x)))) fused in one kernel.  x2d: (M, C)."""
    M, C = x2d.shape
    H = w1.shape[1]
    tile_m = _choose_tile(M)
    grid = pl.cdiv(M, tile_m)
    return pl.pallas_call(
        partial(_mlp_kernel, eps=eps),
        out_shape=jax.ShapeDtypeStruct((M, C), F32),
        grid_spec=pl.GridSpec(
            grid=(grid,),
            in_specs=[
                pl.BlockSpec((tile_m, C), lambda i: (i, 0)),
                pl.BlockSpec((1, C), lambda i: (0, 0)),
                pl.BlockSpec((1, C), lambda i: (0, 0)),
                pl.BlockSpec((C, H), lambda i: (0, 0)),
                pl.BlockSpec((1, H), lambda i: (0, 0)),
                pl.BlockSpec((H, C), lambda i: (0, 0)),
                pl.BlockSpec((1, C), lambda i: (0, 0)),
            ],
            out_specs=pl.BlockSpec((tile_m, C), lambda i: (i, 0)),
        ),
        compiler_params=pltpu.CompilerParams(dimension_semantics=("parallel",)),
    )(x2d.astype(F32), g.reshape(1, C).astype(F32), be.reshape(1, C).astype(F32),
      w1.astype(BF16), b1.reshape(1, H).astype(F32),
      w2.astype(BF16), b2.reshape(1, C).astype(F32))


def _make_attn_kernel(num_heads, C, n_tok, has_mask, do_ln, eps):
    hd = C // num_heads
    scale = hd ** -0.5

    def kernel(*refs):
        idx = 0
        x_ref = refs[idx]; idx += 1
        mask_ref = None
        if has_mask:
            mask_ref = refs[idx]; idx += 1
        bias_ref = refs[idx]; idx += 1
        if do_ln:
            g_ref, be_ref = refs[idx], refs[idx + 1]; idx += 2
        wqkv_ref, bqkv_ref, wproj_ref, bproj_ref, o_ref = refs[idx:idx + 5]

        x = x_ref[...]                           # (tw*N, C) f32
        rows = x.shape[0]
        tw = rows // n_tok
        xn = _ln(x, g_ref[...], be_ref[...], eps) if do_ln else x

        qkv = jnp.dot(xn.astype(BF16), wqkv_ref[...],
                      preferred_element_type=jnp.float32) + bqkv_ref[...]
        qkv3 = qkv.reshape(tw, n_tok, 3 * C)     # free leading-dim split
        bias = bias_ref[...]                     # (nH, N, N) f32
        mask = mask_ref[...] if has_mask else None
        wproj = wproj_ref[...]                   # (C, C) bf16

        y = None
        for h in range(num_heads):
            q = qkv3[:, :, h * hd:(h + 1) * hd] * scale
            k = qkv3[:, :, C + h * hd:C + (h + 1) * hd]
            v = qkv3[:, :, 2 * C + h * hd:2 * C + (h + 1) * hd]
            a = jnp.einsum('wnd,wmd->wnm', q, k,
                           preferred_element_type=jnp.float32)
            a = a + bias[h][None, :, :]
            if has_mask:
                a = a + mask
            a = a - jnp.max(a, axis=-1, keepdims=True)
            p = jnp.exp(a)
            p = p / jnp.sum(p, axis=-1, keepdims=True)
            ho = jnp.einsum('wnm,wmd->wnd', p, v,
                            preferred_element_type=jnp.float32)
            # fold per-head output straight into the projection -> no concat
            contrib = jnp.dot(ho.reshape(rows, hd).astype(BF16),
                              wproj[h * hd:(h + 1) * hd, :],
                              preferred_element_type=jnp.float32)
            y = contrib if y is None else y + contrib
        o_ref[...] = y + bproj_ref[...]
    return kernel


def pallas_window_attention(x_flat, mask, rel_bias, g1, b1, wqkv, bqkv,
                            wproj, bproj, num_heads, n_tok, n_win_per_batch,
                            do_ln=True, eps=EPS):
    """Fused LN1 + window MHSA.  x_flat: (Bw*N, C); mask: None or (nW, N, N)."""
    rows, C = x_flat.shape
    bw = rows // n_tok
    has_mask = mask is not None
    base = n_win_per_batch if has_mask else bw
    tw = _choose_wtile(bw, base, n_tok)
    grid = bw // tw

    inputs = [x_flat.astype(F32)]
    in_specs = [pl.BlockSpec((tw * n_tok, C), lambda i: (i, 0))]
    if has_mask:
        nmb = n_win_per_batch // tw
        inputs.append(mask.astype(F32))
        # per-batch mask selected via block-index arithmetic (no jnp.tile)
        in_specs.append(pl.BlockSpec((tw, n_tok, n_tok),
                                     lambda i: (i % nmb, 0, 0)))
    inputs.append(rel_bias.astype(F32))
    in_specs.append(pl.BlockSpec((num_heads, n_tok, n_tok), lambda i: (0, 0, 0)))
    if do_ln:
        inputs += [g1.reshape(1, C).astype(F32), b1.reshape(1, C).astype(F32)]
        in_specs += [pl.BlockSpec((1, C), lambda i: (0, 0)),
                     pl.BlockSpec((1, C), lambda i: (0, 0))]
    inputs += [wqkv.astype(BF16), bqkv.reshape(1, 3 * C).astype(F32),
               wproj.astype(BF16), bproj.reshape(1, C).astype(F32)]
    in_specs += [pl.BlockSpec((C, 3 * C), lambda i: (0, 0)),
                 pl.BlockSpec((1, 3 * C), lambda i: (0, 0)),
                 pl.BlockSpec((C, C), lambda i: (0, 0)),
                 pl.BlockSpec((1, C), lambda i: (0, 0))]

    return pl.pallas_call(
        _make_attn_kernel(num_heads, C, n_tok, has_mask, do_ln, eps),
        out_shape=jax.ShapeDtypeStruct((rows, C), F32),
        grid_spec=pl.GridSpec(
            grid=(grid,),
            in_specs=in_specs,
            out_specs=pl.BlockSpec((tw * n_tok, C), lambda i: (i, 0)),
        ),
        compiler_params=pltpu.CompilerParams(dimension_semantics=("parallel",)),
    )(*inputs)


# ------------------------------------------------------------------
# Swin helpers (glue, same semantics as the reference)
# ------------------------------------------------------------------
def get_window_size(x_size, window_size, shift_size=None):
    use_ws = list(window_size)
    use_ss = list(shift_size) if shift_size is not None else None
    for i in range(len(x_size)):
        if x_size[i] <= window_size[i]:
            use_ws[i] = x_size[i]
            if shift_size is not None:
                use_ss[i] = 0
    if shift_size is None:
        return tuple(use_ws)
    return tuple(use_ws), tuple(use_ss)


def window_partition(x, ws):
    b, d, h, w, c = x.shape
    x = x.reshape(b, d // ws[0], ws[0], h // ws[1], ws[1], w // ws[2], ws[2], c)
    x = jnp.transpose(x, (0, 1, 3, 5, 2, 4, 6, 7))
    return x.reshape(-1, ws[0] * ws[1] * ws[2], c)


def window_reverse(windows, ws, dims):
    b, d, h, w = dims
    x = windows.reshape(b, d // ws[0], h // ws[1], w // ws[2], ws[0], ws[1], ws[2], -1)
    x = jnp.transpose(x, (0, 1, 4, 2, 5, 3, 6, 7))
    return x.reshape(b, d, h, w, -1)


def compute_mask_np(dims, window_size, shift_size):
    d, h, w = dims
    img_mask = np.zeros((1, d, h, w, 1), dtype=np.float32)
    cnt = 0
    for ds in (slice(-window_size[0]), slice(-window_size[0], -shift_size[0]),
               slice(-shift_size[0], None)):
        for hs in (slice(-window_size[1]), slice(-window_size[1], -shift_size[1]),
                   slice(-shift_size[1], None)):
            for ws_ in (slice(-window_size[2]), slice(-window_size[2], -shift_size[2]),
                        slice(-shift_size[2], None)):
                img_mask[:, ds, hs, ws_, :] = cnt
                cnt += 1
    mw = img_mask.reshape(1, d // window_size[0], window_size[0],
                          h // window_size[1], window_size[1],
                          w // window_size[2], window_size[2], 1)
    mw = mw.transpose(0, 1, 3, 5, 2, 4, 6, 7).reshape(
        -1, window_size[0] * window_size[1] * window_size[2])
    attn_mask = mw[:, None, :] - mw[:, :, None]
    attn_mask = np.where(attn_mask != 0, -100.0, 0.0).astype(np.float32)
    return jnp.asarray(attn_mask)


_REL_IDX_CACHE = {}


def rel_position_index(window_size):
    if window_size in _REL_IDX_CACHE:
        return _REL_IDX_CACHE[window_size]
    wd, wh, ww = window_size
    coords = np.stack(np.meshgrid(np.arange(wd), np.arange(wh), np.arange(ww),
                                  indexing='ij'))
    cf = coords.reshape(3, -1)
    rel = cf[:, :, None] - cf[:, None, :]
    rel = rel.transpose(1, 2, 0).astype(np.int64)
    rel[:, :, 0] += wd - 1
    rel[:, :, 1] += wh - 1
    rel[:, :, 2] += ww - 1
    rel[:, :, 0] *= (2 * wh - 1) * (2 * ww - 1)
    rel[:, :, 1] *= (2 * ww - 1)
    idx = rel.sum(-1)
    _REL_IDX_CACHE[window_size] = idx
    return idx


def relative_bias(table, window_size_cfg, n, num_heads):
    idx = rel_position_index(window_size_cfg)[:n, :n].reshape(-1)
    bias = jnp.take(table, jnp.asarray(idx), axis=0)     # (n*n, nH)
    bias = bias.reshape(n, n, num_heads)
    return jnp.transpose(bias, (2, 0, 1))                # (nH, n, n)


def _jax_layer_norm(x, g, b, eps=EPS):
    mu = jnp.mean(x, axis=-1, keepdims=True)
    xc = x - mu
    var = jnp.mean(xc * xc, axis=-1, keepdims=True)
    return xc * jax.lax.rsqrt(var + eps) * g + b


# ------------------------------------------------------------------
# Swin transformer block / layers
# ------------------------------------------------------------------
def swin_block(x, bp, window_size_cfg, shift_size_cfg, attn_mask):
    b, d, h, w, c = x.shape
    num_heads = bp["num_heads"]
    ws, ss = get_window_size((d, h, w), window_size_cfg, shift_size_cfg)
    pad_d1 = (ws[0] - d % ws[0]) % ws[0]
    pad_b = (ws[1] - h % ws[1]) % ws[1]
    pad_r = (ws[2] - w % ws[2]) % ws[2]
    if pad_d1 or pad_b or pad_r:
        # TODO(synk): rare fallback (never hit at this config) -- LN must precede
        # the zero padding, so apply it in plain JAX and skip the in-kernel LN.
        xp = jnp.pad(_jax_layer_norm(x, bp["norm1_g"], bp["norm1_b"]),
                     ((0, 0), (0, pad_d1), (0, pad_b), (0, pad_r), (0, 0)))
        do_ln = False
    else:
        xp = x
        do_ln = True
    _, dp, hp, wp, _ = xp.shape

    shifted_mask = None
    if any(s > 0 for s in ss):
        shifted = jnp.roll(xp, shift=(-ss[0], -ss[1], -ss[2]), axis=(1, 2, 3))
        shifted_mask = attn_mask
    else:
        shifted = xp

    x_windows = window_partition(shifted, ws)          # (Bw, N, c)
    Bw, N, _ = x_windows.shape
    nW = Bw // b
    rb = relative_bias(bp["rel_table"], window_size_cfg, N, num_heads)

    attn_flat = pallas_window_attention(
        x_windows.reshape(Bw * N, c), shifted_mask, rb,
        bp["norm1_g"], bp["norm1_b"], bp["qkv_w"], bp["qkv_b"],
        bp["proj_w"], bp["proj_b"], num_heads, N, nW, do_ln=do_ln)

    attn_windows = attn_flat.reshape(Bw, N, c)
    shifted = window_reverse(attn_windows, ws, (b, dp, hp, wp))
    if any(s > 0 for s in ss):
        xa = jnp.roll(shifted, shift=(ss[0], ss[1], ss[2]), axis=(1, 2, 3))
    else:
        xa = shifted
    xa = xa[:, :d, :h, :w, :]
    x = x + xa                                          # attention residual

    # fused LN2 -> fc1 -> GELU(exact-erf poly) -> fc2 -> +residual (one kernel)
    out = pallas_mlp(x.reshape(-1, c), bp["norm2_g"], bp["norm2_b"],
                     bp["fc1_w"], bp["fc1_b"], bp["fc2_w"], bp["fc2_b"])
    return out.reshape(x.shape)


def patch_merging(x, p):
    b, d, h, w, c = x.shape
    x = jnp.pad(x, ((0, 0), (0, d % 2), (0, h % 2), (0, w % 2), (0, 0)))
    x0 = x[:, 0::2, 0::2, 0::2, :]
    x1 = x[:, 1::2, 0::2, 0::2, :]
    x2 = x[:, 0::2, 1::2, 0::2, :]
    x3 = x[:, 0::2, 0::2, 1::2, :]
    x4 = x[:, 1::2, 0::2, 1::2, :]
    x5 = x[:, 0::2, 1::2, 0::2, :]   # duplicate of x2 (faithful to reference)
    x6 = x[:, 0::2, 0::2, 1::2, :]   # duplicate of x3 (faithful to reference)
    x7 = x[:, 1::2, 1::2, 1::2, :]
    xc = jnp.concatenate([x0, x1, x2, x3, x4, x5, x6, x7], axis=-1)
    out = pallas_linear(xc.reshape(-1, 8 * c), p["red_w"],
                        ln_g=p["norm_g"], ln_b=p["norm_b"])     # fused LN+Linear
    return out.reshape(xc.shape[:-1] + (2 * c,))


def patch_expanding(x, dim, p):
    b, d, h, w, c = x.shape                     # c == 2 * dim
    x_ = pallas_linear(x.reshape(-1, c), p["exp_w"],
                       ln_g=p["norm_g"], ln_b=p["norm_b"]).reshape(b, d, h, w, 8 * dim)
    out = jnp.zeros((b, 2 * d, 2 * h, 2 * w, c // 2), F32)
    # NOTE: replicate the reference's (buggy) scatter pattern exactly,
    # including overwrites and the two positions that remain zero.
    out = out.at[:, 0::2, 0::2, 0::2, :].set(x_[..., 0 * dim:1 * dim])
    out = out.at[:, 1::2, 0::2, 0::2, :].set(x_[..., 1 * dim:2 * dim])
    out = out.at[:, 0::2, 1::2, 0::2, :].set(x_[..., 2 * dim:3 * dim])
    out = out.at[:, 0::2, 0::2, 1::2, :].set(x_[..., 3 * dim:4 * dim])
    out = out.at[:, 1::2, 0::2, 1::2, :].set(x_[..., 4 * dim:5 * dim])
    out = out.at[:, 0::2, 1::2, 0::2, :].set(x_[..., 5 * dim:6 * dim])
    out = out.at[:, 0::2, 0::2, 1::2, :].set(x_[..., 6 * dim:7 * dim])
    out = out.at[:, 1::2, 1::2, 1::2, :].set(x_[..., 7 * dim:8 * dim])
    return out


def basic_layer(x, lp, window_size_cfg, return_skip=True):
    b, c, d, h, w = x.shape
    shift_cfg = tuple(i // 2 for i in window_size_cfg)
    ws, ss = get_window_size((d, h, w), window_size_cfg, shift_cfg)
    xl = jnp.transpose(x, (0, 2, 3, 4, 1))
    attn_mask = None
    if len(lp["blocks"]) > 1 and any(s > 0 for s in ss):
        dp = int(np.ceil(d / ws[0])) * ws[0]
        hp = int(np.ceil(h / ws[1])) * ws[1]
        wp = int(np.ceil(w / ws[2])) * ws[2]
        attn_mask = compute_mask_np([dp, hp, wp], ws, ss)
    for i, bp in enumerate(lp["blocks"]):
        blk_shift = tuple(0 for _ in window_size_cfg) if i % 2 == 0 else shift_cfg
        xl = swin_block(xl, bp, window_size_cfg, blk_shift, attn_mask)
    skip = jnp.transpose(xl, (0, 4, 1, 2, 3)) if return_skip else None
    if lp.get("downsample") is not None:
        xl = patch_merging(xl, lp["downsample"])
    out = jnp.transpose(xl, (0, 4, 1, 2, 3))
    if return_skip:
        return out, skip
    return out


def basic_up_layer(x, lp, window_size_cfg, dim, skip=None, use_skip=False):
    xl = jnp.transpose(x, (0, 2, 3, 4, 1))
    xl = patch_expanding(xl, dim, lp["upsample"])
    b, d, h, w, c = xl.shape
    if skip is not None:
        xl = jnp.concatenate([xl, jnp.transpose(skip, (0, 2, 3, 4, 1))], axis=-1)
    shift_cfg = tuple(i // 2 for i in window_size_cfg)
    ws, ss = get_window_size((d, h, w), window_size_cfg, shift_cfg)
    attn_mask = None
    if len(lp["blocks"]) > 1 and any(s > 0 for s in ss):
        dp = int(np.ceil(d / ws[0])) * ws[0]
        hp = int(np.ceil(h / ws[1])) * ws[1]
        wp = int(np.ceil(w / ws[2])) * ws[2]
        attn_mask = compute_mask_np([dp, hp, wp], ws, ss)
    for i, bp in enumerate(lp["blocks"]):
        blk_shift = tuple(0 for _ in window_size_cfg) if i % 2 == 0 else shift_cfg
        xl = swin_block(xl, bp, window_size_cfg, blk_shift, attn_mask)
    if use_skip:
        cc = xl.shape[-1]
        xl = pallas_linear(xl.reshape(-1, cc), lp["down_w"],
                           ln_g=lp["down_norm_g"], ln_b=lp["down_norm_b"]
                           ).reshape(xl.shape[:-1] + (dim,))   # fused LN+Linear
    return jnp.transpose(xl, (0, 4, 1, 2, 3))


def patch_embed(x, p, patch_size, embed_dim):
    b, cin, D, H, W = x.shape
    p0, p1, p2 = patch_size
    Dp, Hp, Wp = D // p0, H // p1, W // p2
    xr = x.reshape(b, cin, Dp, p0, Hp, p1, Wp, p2)
    xr = jnp.transpose(xr, (0, 2, 4, 6, 1, 3, 5, 7)).reshape(
        b * Dp * Hp * Wp, cin * p0 * p1 * p2)
    out = pallas_linear(xr, p["w"], p["b"])
    out = out.reshape(b, Dp, Hp, Wp, embed_dim)
    return jnp.transpose(out, (0, 4, 1, 2, 3))


def head_conv(x, w):
    # 1x1x1 Conv3d, no bias
    b, c, d, h, w_sp = x.shape
    xl = jnp.transpose(x, (0, 2, 3, 4, 1)).reshape(-1, c)
    out = pallas_linear(xl, w)
    out = out.reshape(b, d, h, w_sp, w.shape[1])
    return jnp.transpose(out, (0, 4, 1, 2, 3))


# ------------------------------------------------------------------
# Parameter initialization (deterministic, synthetic)
# ------------------------------------------------------------------
class KeyGen:
    def __init__(self, key):
        self._k = key

    def __call__(self):
        self._k, sub = jax.random.split(self._k)
        return sub


def nrm(kg, shape, scale=0.02):
    return (scale * jax.random.normal(kg(), shape)).astype(F32)


def init_block(kg, dim, num_heads, window_size):
    hidden = int(dim * 4.0)
    n_rel = (2 * window_size[0] - 1) * (2 * window_size[1] - 1) * (2 * window_size[2] - 1)
    return dict(
        num_heads=num_heads,
        norm1_g=jnp.ones((dim,), F32), norm1_b=jnp.zeros((dim,), F32),
        qkv_w=nrm(kg, (dim, 3 * dim)), qkv_b=nrm(kg, (3 * dim,)),
        proj_w=nrm(kg, (dim, dim)), proj_b=nrm(kg, (dim,)),
        rel_table=nrm(kg, (n_rel, num_heads)),
        norm2_g=jnp.ones((dim,), F32), norm2_b=jnp.zeros((dim,), F32),
        fc1_w=nrm(kg, (dim, hidden)), fc1_b=nrm(kg, (hidden,)),
        fc2_w=nrm(kg, (hidden, dim)), fc2_b=nrm(kg, (dim,)),
    )


def init_basic_layer(kg, dim, depth, num_heads, window_size, downsample=True):
    p = dict(blocks=[init_block(kg, dim, num_heads, window_size) for _ in range(depth)])
    if downsample:
        p["downsample"] = dict(
            norm_g=jnp.ones((8 * dim,), F32), norm_b=jnp.zeros((8 * dim,), F32),
            red_w=nrm(kg, (8 * dim, 2 * dim)))
    else:
        p["downsample"] = None
    return p


def init_basic_up_layer(kg, dim, depth, num_heads, window_size, use_skip):
    blk_dim = dim * (2 if use_skip else 1)
    p = dict(blocks=[init_block(kg, blk_dim, num_heads, window_size) for _ in range(depth)])
    p["upsample"] = dict(
        norm_g=jnp.ones((2 * dim,), F32), norm_b=jnp.zeros((2 * dim,), F32),
        exp_w=nrm(kg, (2 * dim, 8 * dim)))
    if use_skip:
        p["down_norm_g"] = jnp.ones((2 * dim,), F32)
        p["down_norm_b"] = jnp.zeros((2 * dim,), F32)
        p["down_w"] = nrm(kg, (2 * dim, dim))
    return p


def init_swinunet(key, in_chans, embed_dim, window_size, patch_size, depths, num_heads):
    kg = KeyGen(key)
    P = {}
    P["patch_embed"] = dict(
        w=nrm(kg, (in_chans * patch_size[0] * patch_size[1] * patch_size[2], embed_dim)),
        b=jnp.zeros((embed_dim,), F32))
    num_layers = len(depths)
    P["layers"] = [
        init_basic_layer(kg, embed_dim * 2 ** i, depths[i], num_heads[i],
                         window_size, downsample=True)
        for i in range(num_layers)
    ]
    P["layer4"] = init_basic_layer(kg, embed_dim * 2 ** 3, 1, num_heads[num_layers],
                                   window_size, downsample=False)
    P["layers_up"] = {}
    for i in reversed(range(num_layers)):
        P["layers_up"][i] = init_basic_up_layer(kg, embed_dim * 2 ** i, depths[i],
                                                num_heads[i], window_size, use_skip=True)
    P["layers_up0"] = init_basic_up_layer(kg, embed_dim // 2, 2, num_heads[0],
                                          window_size, use_skip=False)
    P["head_w"] = nrm(kg, (embed_dim // 2, 3))
    return P


# ------------------------------------------------------------------
# SwinUnet forward
# ------------------------------------------------------------------
def swin_unet_forward(params, x, window_size, patch_size, embed_dim):
    x0 = patch_embed(x, params["patch_embed"], patch_size, embed_dim)   # pos_drop = id
    x1, x1_skip = basic_layer(x0, params["layers"][0], window_size)
    x2, x2_skip = basic_layer(x1, params["layers"][1], window_size)
    x3, x3_skip = basic_layer(x2, params["layers"][2], window_size)
    x4 = basic_layer(x3, params["layer4"], window_size, return_skip=False)
    x3_ = basic_up_layer(x4, params["layers_up"][2], window_size, embed_dim * 4,
                         skip=x3_skip, use_skip=True)
    x2_ = basic_up_layer(x3_, params["layers_up"][1], window_size, embed_dim * 2,
                         skip=x2_skip, use_skip=True)
    x1_ = basic_up_layer(x2_, params["layers_up"][0], window_size, embed_dim,
                         skip=x1_skip, use_skip=True)
    x0_ = basic_up_layer(x1_, params["layers_up0"], window_size, embed_dim // 2,
                         skip=None, use_skip=False)
    return head_conv(x0_, params["head_w"])


if __name__ == "__main__":
    in_chans = 4
    embed_dim = 16
    window_size = (2, 2, 2)
    patch_size = (2, 2, 2)
    depths = (1, 1, 1)
    num_heads = (2, 2, 2, 2)

    key = jax.random.PRNGKey(0)
    pkey, xkey = jax.random.split(key)
    params = init_swinunet(pkey, in_chans, embed_dim, window_size, patch_size,
                           depths, num_heads)
    # Spatial must be divisible by patch_size * 2^3 so the U-Net stages line up.
    x = jax.random.normal(xkey, (1, in_chans, 32, 32, 32), F32)

    out = swin_unet_forward(params, x, window_size, patch_size, embed_dim)
    out = jax.block_until_ready(out)
    assert out.shape == (1, 3, 32, 32, 32), out.shape
    assert bool(jnp.all(jnp.isfinite(out)))
    print("KERNEL_OK")
</pallas_src>

<mosaic_0001>
module attributes {stable_mosaic.version = 11 : i64} {
  func.func @kernel(%arg0: i32, %arg1: memref<512x32xf32, #tpu.memory_space<vmem>>, %arg2: memref<32x16xbf16, #tpu.memory_space<vmem>>, %arg3: memref<1x16xf32, #tpu.memory_space<vmem>>, %arg4: memref<512x16xf32, #tpu.memory_space<vmem>>) attributes {dimension_semantics = [#tpu.dimension_semantics<parallel>], iteration_bounds = array<i64: 8>, scalar_prefetch = 0 : i64, scratch_operands = 0 : i64, tpu.core_type = #tpu.core_type<tc>, window_params = [{transform_indices = @transform_0, window_bounds = array<i64: 512, 32>}, {pipeline_mode = #tpu.pipeline_mode<synchronous>, transform_indices = @transform_1, window_bounds = array<i64: 32, 16>}, {pipeline_mode = #tpu.pipeline_mode<synchronous>, transform_indices = @transform_2, window_bounds = array<i64: 1, 16>}, {transform_indices = @transform_3, window_bounds = array<i64: 512, 16>}]} {
    %c0 = arith.constant 0 : index
    %c0_0 = arith.constant 0 : index
    %0 = vector.load %arg1[%c0, %c0_0] : memref<512x32xf32, #tpu.memory_space<vmem>>, vector<512x32xf32>
    %1 = arith.truncf %0 : vector<512x32xf32> to vector<512x32xbf16>
    %c0_1 = arith.constant 0 : index
    %c0_2 = arith.constant 0 : index
    %2 = vector.load %arg2[%c0_1, %c0_2] : memref<32x16xbf16, #tpu.memory_space<vmem>>, vector<32x16xbf16>
    %cst = arith.constant dense<0.000000e+00> : vector<512x16xf32>
    %3 = tpu.matmul %1, %2, %cst {dimension_numbers = #tpu.dot_dimension_numbers<[1], [0], [0], [1], [0, 0, 1, 1], [], []>} : vector<512x32xbf16>, vector<32x16xbf16>, vector<512x16xf32> -> vector<512x16xf32>
    %c0_3 = arith.constant 0 : index
    %c0_4 = arith.constant 0 : index
    %4 = vector.load %arg3[%c0_3, %c0_4] : memref<1x16xf32, #tpu.memory_space<vmem>>, vector<1x16xf32>
    %5 = vector.broadcast %4 : vector<1x16xf32> to vector<512x16xf32>
    %6 = arith.addf %3, %5 : vector<512x16xf32>
    %c0_5 = arith.constant 0 : index
    %c0_6 = arith.constant 0 : index
    %7 = vector.load %arg4[%c0_5, %c0_6] : memref<512x16xf32, #tpu.memory_space<vmem>>, vector<512x16xf32>
    tpu.vector_store %arg4[%c0_5, %c0_6], %6 {strides = array<i32>} : memref<512x16xf32, #tpu.memory_space<vmem>>, vector<512x16xf32>,
    return
  }
  func.func @transform_0(%arg0: i32) -> (i32, i32) {
    %c0_i32 = arith.constant 0 : i32
    %c0_i32_0 = arith.constant 0 : i32
    return %arg0, %c0_i32 : i32, i32
  }
  func.func @transform_1(%arg0: i32) -> (i32, i32) {
    %c0_i32 = arith.constant 0 : i32
    %c0_i32_0 = arith.constant 0 : i32
    %c0_i32_1 = arith.constant 0 : i32
    return %c0_i32, %c0_i32_0 : i32, i32
  }
  func.func @transform_2(%arg0: i32) -> (i32, i32) {
    %c0_i32 = arith.constant 0 : i32
    %c0_i32_0 = arith.constant 0 : i32
    %c0_i32_1 = arith.constant 0 : i32
    return %c0_i32, %c0_i32_0 : i32, i32
  }
  func.func @transform_3(%arg0: i32) -> (i32, i32) {
    %c0_i32 = arith.constant 0 : i32
    %c0_i32_0 = arith.constant 0 : i32
    return %arg0, %c0_i32 : i32, i32
  }
}

</mosaic_0001>

<bundles_post_ra>
// kernel: tpu_custom_call.1
= control target key start
LH: loop header
LB: loop body
LE: loop exit
PB: predicated region body
PF: predicated region fallthrough
CT: control target
= control target key end

     0   :  { %s774_s12 = smov 0   ;;  %s1101_s0 = inlined_call_operand.vmem [shape: f32[4096,32], index: 0, kind: input, shape index: {}]   ;;  %s1102_s1 = inlined_call_operand.vmem [shape: bf16[32,16], index: 1, kind: input, shape index: {}]   ;;  %s1103_s2 = inlined_call_operand.vmem [shape: f32[1,16], index: 2, kind: input, shape index: {}]   ;;  %s1104_s3 = inlined_call_operand.vmem [shape: f32[4096,16], index: 3, kind: output, shape index: {}]  }
   0x1 LB: > { %s678_s13 = sadd.s32 4294967295, %s752_s12   ;;  %p682_p0 = scmp.ge.s32.totalorder %s752_s12, 1  ;;  %s752_s12 = sphi %s774_s12, %s13_s12  }
   0x2   : > { %p138_p1 = scmp.lt.s32.totalorder %s752_s12, 9 }
   0x4   : > { %p139_p2 = pnand %p682_p0, %p138_p1 }
   0x5   : > { %s683_s16 = sshll.u32 (!%p139_p2), %s678_s13, 6 }
   0x6   : > { %142 = sbr.rel (%p139_p2) target bundleno = 276 (0x114), region = 32  ;;  %p163_p3 = scmp.lt.s32.totalorder (!%p139_p2), %s683_s16, 511 }
   0xb   : > { %v730_v0 = vld [vmem:[%s1102_s1 + $0x8] sm:$0xff]  ;;  %v729_v1 = vld [vmem:[%s1102_s1] sm:$0xff]  ;;  %s1106_s16 = smov (!%p163_p3, %s683_s16), 511  ;;  %vm291_vm0 = vcmask 261120   ;;  %vm557_vm1 = vcmask 130048  }
   0xc   : > { %394 = vmatpush.bf16.msra.mxu0 %v730_v0  ;;  %731 = vmatpush.bf16.msra.mxu1 %v730_v0  ;;  %s684_s19 = sshll.u32 %s1106_s16, 3 }
   0xd   : > { %732 = vmatpush.bf16.msra.mxu2 %v730_v0  ;;  %733 = vmatpush.bf16.msra.mxu3 %v730_v0  ;;  %s796_s22 = scalar_lea.vmem %s1101_s0, %s684_s19  ;;  %s904_s27 = scalar_lea.vmem %s1104_s3, %s684_s19 }
   0xe   : > { %v175_v2 = vld [vmem:[%s796_s22] sm:$0xff]  ;;  %v176_v3 = vld [vmem:[%s796_s22 + $0x8] sm:$0xff]  ;;  %v177_v14 = vld [vmem:[%s796_s22 + $0x10] sm:$0xff] }
   0xf   : > { %v191_v4 = vld [vmem:[%s796_s22 + $0x80] sm:$0xff]  ;;  %v239_v5 = vpack.c.bf16 %v176_v3, %v175_v2  ;;  %v192_v6 = vld [vmem:[%s796_s22 + $0x88] sm:$0xff]  ;;  %v178_v15 = vld [vmem:[%s796_s22 + $0x18] sm:$0xff] }
  0x10   : > { %395 = vmatpush.bf16.msra.mxu0 %v729_v1  ;;  %734 = vmatpush.bf16.msra.mxu1 %v729_v1  ;;  %v207_v7 = vld [vmem:[%s796_s22 + $0x100] sm:$0xff]  ;;  %v208_v8 = vld [vmem:[%s796_s22 + $0x108] sm:$0xff]  ;;  %v247_v9 = vpack.c.bf16 %v192_v6, %v191_v4  ;;  %v193_v16 = vld [vmem:[%s796_s22 + $0x90] sm:$0xff]  ;;  %v240_v22 = vpack.c.bf16 %v178_v15, %v177_v14 }
  0x11   : > { %735 = vmatpush.bf16.msra.mxu2 %v729_v1  ;;  %736 = vmatpush.bf16.msra.mxu3 %v729_v1  ;;  %v255_v10 = vpack.c.bf16 %v208_v8, %v207_v7  ;;  %v223_v11 = vld [vmem:[%s796_s22 + $0x180] sm:$0xff]  ;;  %v224_v12 = vld [vmem:[%s796_s22 + $0x188] sm:$0xff]  ;;  %v194_v17 = vld [vmem:[%s796_s22 + $0x98] sm:$0xff] }
  0x12   : > { %v263_v13 = vpack.c.bf16 %v224_v12, %v223_v11  ;;  %v209_v18 = vld [vmem:[%s796_s22 + $0x110] sm:$0xff]  ;;  %v210_v19 = vld [vmem:[%s796_s22 + $0x118] sm:$0xff]  ;;  %v248_v23 = vpack.c.bf16 %v194_v17, %v193_v16  ;;  %v179_v26 = vld [vmem:[%s796_s22 + $0x20] sm:$0xff] }
  0x13   : > { %695 = vmatmul.msk.bf16.vlgmr.msra.gmra.mxu0 %vm291_vm0, %v239_v5  ;;  %703 = vmatmul.msk.bf16.vlgmr.msra.gmra.mxu1 %vm291_vm0, %v247_v9  ;;  %v225_v20 = vld [vmem:[%s796_s22 + $0x190] sm:$0xff]  ;;  %v226_v21 = vld [vmem:[%s796_s22 + $0x198] sm:$0xff]  ;;  %v256_v24 = vpack.c.bf16 %v210_v19, %v209_v18  ;;  %v180_v27 = vld [vmem:[%s796_s22 + $0x28] sm:$0xff] }
  0x14   : > { %711 = vmatmul.msk.bf16.vlgmr.msra.gmra.mxu2 %vm291_vm0, %v255_v10  ;;  %719 = vmatmul.msk.bf16.vlgmr.msra.gmra.mxu3 %vm291_vm0, %v263_v13  ;;  %v264_v25 = vpack.c.bf16 %v226_v21, %v225_v20  ;;  %v195_v28 = vld [vmem:[%s796_s22 + $0xa0] sm:$0xff]  ;;  %v196_v29 = vld [vmem:[%s796_s22 + $0xa8] sm:$0xff]  ;;  %v241_v34 = vpack.c.bf16 %v180_v27, %v179_v26  ;;  %v181_v38 = vld [vmem:[%s796_s22 + $0x30] sm:$0xff] }
  0x15   : > { %v211_v30 = vld [vmem:[%s796_s22 + $0x120] sm:$0xff]  ;;  %v212_v31 = vld [vmem:[%s796_s22 + $0x128] sm:$0xff]  ;;  %v249_v35 = vpack.c.bf16 %v196_v29, %v195_v28  ;;  %v182_v39 = vld [vmem:[%s796_s22 + $0x38] sm:$0xff] }
  0x16   : > { %v227_v32 = vld [vmem:[%s796_s22 + $0x1a0] sm:$0xff]  ;;  %v228_v33 = vld [vmem:[%s796_s22 + $0x1a8] sm:$0xff]  ;;  %v257_v36 = vpack.c.bf16 %v212_v31, %v211_v30  ;;  %v197_v40 = vld [vmem:[%s796_s22 + $0xb0] sm:$0xff]  ;;  %v242_v46 = vpack.c.bf16 %v182_v39, %v181_v38 }
  0x17   : > { %v265_v37 = vpack.c.bf16 %v228_v33, %v227_v32  ;;  %v198_v41 = vld [vmem:[%s796_s22 + $0xb8] sm:$0xff]  ;;  %v213_v42 = vld [vmem:[%s796_s22 + $0x130] sm:$0xff]  ;;  %v183_v50 = vld [vmem:[%s796_s22 + $0x40] sm:$0xff] }
  0x18   : > { %v214_v43 = vld [vmem:[%s796_s22 + $0x138] sm:$0xff]  ;;  %v229_v44 = vld [vmem:[%s796_s22 + $0x1b0] sm:$0xff]  ;;  %v250_v47 = vpack.c.bf16 %v198_v41, %v197_v40  ;;  %v184_v51 = vld [vmem:[%s796_s22 + $0x48] sm:$0xff] }
  0x19   : > { %v230_v45 = vld [vmem:[%s796_s22 + $0x1b8] sm:$0xff]  ;;  %v258_v48 = vpack.c.bf16 %v214_v43, %v213_v42  ;;  %v199_v52 = vld [vmem:[%s796_s22 + $0xc0] sm:$0xff]  ;;  %v200_v53 = vld [vmem:[%s796_s22 + $0xc8] sm:$0xff]  ;;  %v243_v58 = vpack.c.bf16 %v184_v51, %v183_v50 }
  0x1a   : > { %v266_v49 = vpack.c.bf16 %v230_v45, %v229_v44  ;;  %v215_v54 = vld [vmem:[%s796_s22 + $0x140] sm:$0xff]  ;;  %v216_v55 = vld [vmem:[%s796_s22 + $0x148] sm:$0xff]  ;;  %v251_v59 = vpack.c.bf16 %v200_v53, %v199_v52  ;;  %v185_v62 = vld [vmem:[%s796_s22 + $0x50] sm:$0xff] }
  0x1b   : > { %v231_v56 = vld [vmem:[%s796_s22 + $0x1c0] sm:$0xff]  ;;  %v232_v57 = vld [vmem:[%s796_s22 + $0x1c8] sm:$0xff]  ;;  %v259_v60 = vpack.c.bf16 %v216_v55, %v215_v54  ;;  %v186_v63 = vld [vmem:[%s796_s22 + $0x58] sm:$0xff] }
  0x1c   : > { %v267_v61 = vpack.c.bf16 %v232_v57, %v231_v56  ;;  %v201_v0 = vld [vmem:[%s796_s22 + $0xd0] sm:$0xff]  ;;  %v202_v1 = vld [vmem:[%s796_s22 + $0xd8] sm:$0xff]  ;;  %v244_v6 = vpack.c.bf16 %v186_v63, %v185_v62  ;;  %v187_v10 = vld [vmem:[%s796_s22 + $0x60] sm:$0xff] }
  0x1d   : > { %v217_v2 = vld [vmem:[%s796_s22 + $0x150] sm:$0xff]  ;;  %v218_v3 = vld [vmem:[%s796_s22 + $0x158] sm:$0xff]  ;;  %v252_v7 = vpack.c.bf16 %v202_v1, %v201_v0  ;;  %v188_v11 = vld [vmem:[%s796_s22 + $0x68] sm:$0xff] }
  0x1e   : > { %v233_v4 = vld [vmem:[%s796_s22 + $0x1d0] sm:$0xff]  ;;  %v234_v5 = vld [vmem:[%s796_s22 + $0x1d8] sm:$0xff]  ;;  %v260_v8 = vpack.c.bf16 %v218_v3, %v217_v2  ;;  %v203_v12 = vld [vmem:[%s796_s22 + $0xe0] sm:$0xff]  ;;  %v245_v18 = vpack.c.bf16 %v188_v11, %v187_v10 }
  0x1f   : > { %v268_v9 = vpack.c.bf16 %v234_v5, %v233_v4  ;;  %v204_v13 = vld [vmem:[%s796_s22 + $0xe8] sm:$0xff]  ;;  %v219_v14 = vld [vmem:[%s796_s22 + $0x160] sm:$0xff]  ;;  %v221_v26 = vld [vmem:[%s796_s22 + $0x170] sm:$0xff] }
  0x20   : > { %v220_v15 = vld [vmem:[%s796_s22 + $0x168] sm:$0xff]  ;;  %v235_v16 = vld [vmem:[%s796_s22 + $0x1e0] sm:$0xff]  ;;  %v253_v19 = vpack.c.bf16 %v204_v13, %v203_v12  ;;  %v222_v27 = vld [vmem:[%s796_s22 + $0x178] sm:$0xff] }
  0x21   : > { %v236_v17 = vld [vmem:[%s796_s22 + $0x1e8] sm:$0xff]  ;;  %v261_v20 = vpack.c.bf16 %v220_v15, %v219_v14  ;;  %v237_v28 = vld [vmem:[%s796_s22 + $0x1f0] sm:$0xff]  ;;  %v238_v29 = vld [vmem:[%s796_s22 + $0x1f8] sm:$0xff]  ;;  %v262_v32 = vpack.c.bf16 %v222_v27, %v221_v26 }
  0x22   : > { %v269_v21 = vpack.c.bf16 %v236_v17, %v235_v16  ;;  %v270_v33 = vpack.c.bf16 %v238_v29, %v237_v28 }
  0x23   : > { %696 = vmatmul.msk.bf16.gmra.mxu0 %vm291_vm0, %v240_v22  ;;  %704 = vmatmul.msk.bf16.gmra.mxu1 %vm291_vm0, %v248_v23  ;;  %v189_v22 = vld [vmem:[%s796_s22 + $0x70] sm:$0xff]  ;;  %v190_v23 = vld [vmem:[%s796_s22 + $0x78] sm:$0xff] }
  0x24   : > { %712 = vmatmul.msk.bf16.gmra.mxu2 %vm291_vm0, %v256_v24  ;;  %720 = vmatmul.msk.bf16.gmra.mxu3 %vm291_vm0, %v264_v25  ;;  %v205_v24 = vld [vmem:[%s796_s22 + $0xf0] sm:$0xff]  ;;  %v206_v25 = vld [vmem:[%s796_s22 + $0xf8] sm:$0xff]  ;;  %v246_v30 = vpack.c.bf16 %v190_v23, %v189_v22 }
  0x25   : > { %v254_v31 = vpack.c.bf16 %v206_v25, %v205_v24 }
  0x33   : > { %697 = vmatmul.msk.bf16.gmra.mxu0 %vm291_vm0, %v241_v34  ;;  %705 = vmatmul.msk.bf16.gmra.mxu1 %vm291_vm0, %v249_v35  ;;  %v897_v34 = vld [vmem:[%s1103_s2] ss:$0 sm:$0xff] }
  0x34   : > { %713 = vmatmul.msk.bf16.gmra.mxu2 %vm291_vm0, %v257_v36  ;;  %721 = vmatmul.msk.bf16.gmra.mxu3 %vm291_vm0, %v265_v37 }
  0x43   : > { %698 = vmatmul.msk.bf16.gmra.mxu0 %vm291_vm0, %v242_v46  ;;  %706 = vmatmul.msk.bf16.gmra.mxu1 %vm291_vm0, %v250_v47 }
  0x44   : > { %714 = vmatmul.msk.bf16.gmra.mxu2 %vm291_vm0, %v258_v48  ;;  %722 = vmatmul.msk.bf16.gmra.mxu3 %vm291_vm0, %v266_v49 }
  0x53   : > { %699 = vmatmul.msk.bf16.gmra.mxu0 %vm291_vm0, %v243_v58  ;;  %707 = vmatmul.msk.bf16.gmra.mxu1 %vm291_vm0, %v251_v59 }
  0x54   : > { %715 = vmatmul.msk.bf16.gmra.mxu2 %vm291_vm0, %v259_v60  ;;  %723 = vmatmul.msk.bf16.gmra.mxu3 %vm291_vm0, %v267_v61 }
  0x63   : > { %700 = vmatmul.msk.bf16.gmra.mxu0 %vm291_vm0, %v244_v6  ;;  %708 = vmatmul.msk.bf16.gmra.mxu1 %vm291_vm0, %v252_v7 }
  0x64   : > { %716 = vmatmul.msk.bf16.gmra.mxu2 %vm291_vm0, %v260_v8  ;;  %724 = vmatmul.msk.bf16.gmra.mxu3 %vm291_vm0, %v268_v9 }
  0x73   : > { %701 = vmatmul.msk.bf16.gmra.mxu0 %vm291_vm0, %v245_v18  ;;  %709 = vmatmul.msk.bf16.gmra.mxu1 %vm291_vm0, %v253_v19 }
  0x74   : > { %717 = vmatmul.msk.bf16.gmra.mxu2 %vm291_vm0, %v261_v20  ;;  %725 = vmatmul.msk.bf16.gmra.mxu3 %vm291_vm0, %v269_v21 }
  0x83   : > { %702 = vmatmul.msk.bf16.gmra.mxu0 %vm291_vm0, %v246_v30  ;;  %710 = vmatmul.msk.bf16.gmra.mxu1 %vm291_vm0, %v254_v31 }
  0x84   : > { %718 = vmatmul.msk.bf16.gmra.mxu2 %vm291_vm0, %v262_v32  ;;  %726 = vmatmul.msk.bf16.gmra.mxu3 %vm291_vm0, %v270_v33 }
  0x90   : > { %v397_v35 = vpop.f32.mrf.mxu0  ;;  %v437_v37 = vpop.f32.mrf.mxu1 }
  0x91   : > { %v398_v36 = vadd.f32 %v897_v34, %v397_v35  ;;  %v438_v38 = vadd.f32 %v897_v34, %v437_v37 }
  0x93   : > { %558 = vst.msk [vmem:[%s904_s27] sm:$0xff] %vm557_vm1, %v398_v36 }
  0x94   : > { %574 = vst.msk [vmem:[%s904_s27 + $0x80] sm:$0xff] %vm557_vm1, %v438_v38 }
  0x97   : > { %v477_v39 = vpop.f32.mrf.mxu2  ;;  %v517_v41 = vpop.f32.mrf.mxu3 }
  0x98   : > { %v478_v40 = vadd.f32 %v897_v34, %v477_v39  ;;  %v399_v42 = vpop.f32.mrf.mxu0  ;;  %v518_v43 = vadd.f32 %v897_v34, %v517_v41  ;;  %v439_v45 = vpop.f32.mrf.mxu1 }
  0x99   : > { %v400_v44 = vadd.f32 %v897_v34, %v399_v42  ;;  %v440_v46 = vadd.f32 %v897_v34, %v439_v45 }
  0x9a   : > { %590 = vst.msk [vmem:[%s904_s27 + $0x100] sm:$0xff] %vm557_vm1, %v478_v40 }
  0x9b   : > { %606 = vst.msk [vmem:[%s904_s27 + $0x180] sm:$0xff] %vm557_vm1, %v518_v43 }
  0x9c   : > { %559 = vst.msk [vmem:[%s904_s27 + $0x8] sm:$0xff] %vm557_vm1, %v400_v44 }
  0x9d   : > { %575 = vst.msk [vmem:[%s904_s27 + $0x88] sm:$0xff] %vm557_vm1, %v440_v46 }
  0x9f   : > { %v479_v47 = vpop.f32.mrf.mxu2  ;;  %v519_v49 = vpop.f32.mrf.mxu3 }
  0xa0   : > { %v480_v48 = vadd.f32 %v897_v34, %v479_v47  ;;  %v402_v50 = vpop.f32.mrf.mxu0  ;;  %v520_v51 = vadd.f32 %v897_v34, %v519_v49  ;;  %v442_v53 = vpop.f32.mrf.mxu1 }
  0xa1   : > { %v403_v52 = vadd.f32 %v897_v34, %v402_v50  ;;  %v443_v54 = vadd.f32 %v897_v34, %v442_v53 }
  0xa2   : > { %591 = vst.msk [vmem:[%s904_s27 + $0x108] sm:$0xff] %vm557_vm1, %v480_v48 }
  0xa3   : > { %607 = vst.msk [vmem:[%s904_s27 + $0x188] sm:$0xff] %vm557_vm1, %v520_v51 }
  0xa4   : > { %560 = vst.msk [vmem:[%s904_s27 + $0x10] sm:$0xff] %vm557_vm1, %v403_v52 }
  0xa5   : > { %576 = vst.msk [vmem:[%s904_s27 + $0x90] sm:$0xff] %vm557_vm1, %v443_v54 }
  0xa7   : > { %v482_v55 = vpop.f32.mrf.mxu2  ;;  %v522_v57 = vpop.f32.mrf.mxu3 }
  0xa8   : > { %v483_v56 = vadd.f32 %v897_v34, %v482_v55  ;;  %v404_v58 = vpop.f32.mrf.mxu0  ;;  %v523_v59 = vadd.f32 %v897_v34, %v522_v57  ;;  %v444_v61 = vpop.f32.mrf.mxu1 }
  0xa9   : > { %v405_v60 = vadd.f32 %v897_v34, %v404_v58  ;;  %v445_v62 = vadd.f32 %v897_v34, %v444_v61 }
  0xaa   : > { %592 = vst.msk [vmem:[%s904_s27 + $0x110] sm:$0xff] %vm557_vm1, %v483_v56 }
  0xab   : > { %608 = vst.msk [vmem:[%s904_s27 + $0x190] sm:$0xff] %vm557_vm1, %v523_v59 }
  0xac   : > { %561 = vst.msk [vmem:[%s904_s27 + $0x18] sm:$0xff] %vm557_vm1, %v405_v60 }
  0xad   : > { %577 = vst.msk [vmem:[%s904_s27 + $0x98] sm:$0xff] %vm557_vm1, %v445_v62 }
  0xaf   : > { %v484_v63 = vpop.f32.mrf.mxu2  ;;  %v524_v1 = vpop.f32.mrf.mxu3 }
  0xb0   : > { %v485_v0 = vadd.f32 %v897_v34, %v484_v63  ;;  %v407_v2 = vpop.f32.mrf.mxu0  ;;  %v525_v3 = vadd.f32 %v897_v34, %v524_v1  ;;  %v447_v5 = vpop.f32.mrf.mxu1 }
  0xb1   : > { %v408_v4 = vadd.f32 %v897_v34, %v407_v2  ;;  %v448_v6 = vadd.f32 %v897_v34, %v447_v5 }
  0xb2   : > { %593 = vst.msk [vmem:[%s904_s27 + $0x118] sm:$0xff] %vm557_vm1, %v485_v0 }
  0xb3   : > { %609 = vst.msk [vmem:[%s904_s27 + $0x198] sm:$0xff] %vm557_vm1, %v525_v3 }
  0xb4   : > { %562 = vst.msk [vmem:[%s904_s27 + $0x20] sm:$0xff] %vm557_vm1, %v408_v4 }
  0xb5   : > { %578 = vst.msk [vmem:[%s904_s27 + $0xa0] sm:$0xff] %vm557_vm1, %v448_v6 }
  0xb7   : > { %v487_v7 = vpop.f32.mrf.mxu2  ;;  %v527_v9 = vpop.f32.mrf.mxu3 }
  0xb8   : > { %v488_v8 = vadd.f32 %v897_v34, %v487_v7  ;;  %v409_v10 = vpop.f32.mrf.mxu0  ;;  %v528_v11 = vadd.f32 %v897_v34, %v527_v9  ;;  %v449_v13 = vpop.f32.mrf.mxu1 }
  0xb9   : > { %v410_v12 = vadd.f32 %v897_v34, %v409_v10  ;;  %v450_v14 = vadd.f32 %v897_v34, %v449_v13 }
  0xba   : > { %594 = vst.msk [vmem:[%s904_s27 + $0x120] sm:$0xff] %vm557_vm1, %v488_v8 }
  0xbb   : > { %610 = vst.msk [vmem:[%s904_s27 + $0x1a0] sm:$0xff] %vm557_vm1, %v528_v11 }
  0xbc   : > { %563 = vst.msk [vmem:[%s904_s27 + $0x28] sm:$0xff] %vm557_vm1, %v410_v12 }
  0xbd   : > { %579 = vst.msk [vmem:[%s904_s27 + $0xa8] sm:$0xff] %vm557_vm1, %v450_v14 }
  0xbf   : > { %v489_v15 = vpop.f32.mrf.mxu2  ;;  %v529_v17 = vpop.f32.mrf.mxu3 }
  0xc0   : > { %v490_v16 = vadd.f32 %v897_v34, %v489_v15  ;;  %v412_v18 = vpop.f32.mrf.mxu0  ;;  %v530_v19 = vadd.f32 %v897_v34, %v529_v17  ;;  %v452_v21 = vpop.f32.mrf.mxu1 }
  0xc1   : > { %v413_v20 = vadd.f32 %v897_v34, %v412_v18  ;;  %v453_v22 = vadd.f32 %v897_v34, %v452_v21 }
  0xc2   : > { %595 = vst.msk [vmem:[%s904_s27 + $0x128] sm:$0xff] %vm557_vm1, %v490_v16 }
  0xc3   : > { %611 = vst.msk [vmem:[%s904_s27 + $0x1a8] sm:$0xff] %vm557_vm1, %v530_v19 }
  0xc4   : > { %564 = vst.msk [vmem:[%s904_s27 + $0x30] sm:$0xff] %vm557_vm1, %v413_v20 }
  0xc5   : > { %580 = vst.msk [vmem:[%s904_s27 + $0xb0] sm:$0xff] %vm557_vm1, %v453_v22 }
  0xc7   : > { %v492_v23 = vpop.f32.mrf.mxu2  ;;  %v532_v25 = vpop.f32.mrf.mxu3 }
  0xc8   : > { %v493_v24 = vadd.f32 %v897_v34, %v492_v23  ;;  %v414_v26 = vpop.f32.mrf.mxu0  ;;  %v533_v27 = vadd.f32 %v897_v34, %v532_v25  ;;  %v454_v29 = vpop.f32.mrf.mxu1 }
  0xc9   : > { %v415_v28 = vadd.f32 %v897_v34, %v414_v26  ;;  %v455_v30 = vadd.f32 %v897_v34, %v454_v29 }
  0xca   : > { %596 = vst.msk [vmem:[%s904_s27 + $0x130] sm:$0xff] %vm557_vm1, %v493_v24 }
  0xcb   : > { %612 = vst.msk [vmem:[%s904_s27 + $0x1b0] sm:$0xff] %vm557_vm1, %v533_v27 }
  0xcc   : > { %565 = vst.msk [vmem:[%s904_s27 + $0x38] sm:$0xff] %vm557_vm1, %v415_v28 }
  0xcd   : > { %581 = vst.msk [vmem:[%s904_s27 + $0xb8] sm:$0xff] %vm557_vm1, %v455_v30 }
  0xcf   : > { %v494_v31 = vpop.f32.mrf.mxu2  ;;  %v534_v33 = vpop.f32.mrf.mxu3 }
  0xd0   : > { %v495_v32 = vadd.f32 %v897_v34, %v494_v31  ;;  %v417_v35 = vpop.f32.mrf.mxu0  ;;  %v535_v36 = vadd.f32 %v897_v34, %v534_v33  ;;  %v457_v38 = vpop.f32.mrf.mxu1 }
  0xd1   : > { %v418_v37 = vadd.f32 %v897_v34, %v417_v35  ;;  %v458_v39 = vadd.f32 %v897_v34, %v457_v38 }
  0xd2   : > { %597 = vst.msk [vmem:[%s904_s27 + $0x138] sm:$0xff] %vm557_vm1, %v495_v32 }
  0xd3   : > { %613 = vst.msk [vmem:[%s904_s27 + $0x1b8] sm:$0xff] %vm557_vm1, %v535_v36 }
  0xd4   : > { %566 = vst.msk [vmem:[%s904_s27 + $0x40] sm:$0xff] %vm557_vm1, %v418_v37 }
  0xd5   : > { %582 = vst.msk [vmem:[%s904_s27 + $0xc0] sm:$0xff] %vm557_vm1, %v458_v39 }
  0xd7   : > { %v497_v40 = vpop.f32.mrf.mxu2  ;;  %v537_v42 = vpop.f32.mrf.mxu3 }
  0xd8   : > { %v498_v41 = vadd.f32 %v897_v34, %v497_v40  ;;  %v419_v43 = vpop.f32.mrf.mxu0  ;;  %v538_v44 = vadd.f32 %v897_v34, %v537_v42  ;;  %v459_v46 = vpop.f32.mrf.mxu1 }
  0xd9   : > { %v420_v45 = vadd.f32 %v897_v34, %v419_v43  ;;  %v460_v47 = vadd.f32 %v897_v34, %v459_v46 }
  0xda   : > { %598 = vst.msk [vmem:[%s904_s27 + $0x140] sm:$0xff] %vm557_vm1, %v498_v41 }
  0xdb   : > { %614 = vst.msk [vmem:[%s904_s27 + $0x1c0] sm:$0xff] %vm557_vm1, %v538_v44 }
  0xdc   : > { %567 = vst.msk [vmem:[%s904_s27 + $0x48] sm:$0xff] %vm557_vm1, %v420_v45 }
  0xdd   : > { %583 = vst.msk [vmem:[%s904_s27 + $0xc8] sm:$0xff] %vm557_vm1, %v460_v47 }
  0xdf   : > { %v499_v48 = vpop.f32.mrf.mxu2  ;;  %v539_v50 = vpop.f32.mrf.mxu3 }
  0xe0   : > { %v500_v49 = vadd.f32 %v897_v34, %v499_v48  ;;  %v422_v51 = vpop.f32.mrf.mxu0  ;;  %v540_v52 = vadd.f32 %v897_v34, %v539_v50  ;;  %v462_v54 = vpop.f32.mrf.mxu1 }
  0xe1   : > { %v423_v53 = vadd.f32 %v897_v34, %v422_v51  ;;  %v463_v55 = vadd.f32 %v897_v34, %v462_v54 }
  0xe2   : > { %599 = vst.msk [vmem:[%s904_s27 + $0x148] sm:$0xff] %vm557_vm1, %v500_v49 }
  0xe3   : > { %615 = vst.msk [vmem:[%s904_s27 + $0x1c8] sm:$0xff] %vm557_vm1, %v540_v52 }
  0xe4   : > { %568 = vst.msk [vmem:[%s904_s27 + $0x50] sm:$0xff] %vm557_vm1, %v423_v53 }
  0xe5   : > { %584 = vst.msk [vmem:[%s904_s27 + $0xd0] sm:$0xff] %vm557_vm1, %v463_v55 }
  0xe7   : > { %v502_v56 = vpop.f32.mrf.mxu2  ;;  %v542_v58 = vpop.f32.mrf.mxu3 }
  0xe8   : > { %v503_v57 = vadd.f32 %v897_v34, %v502_v56  ;;  %v424_v59 = vpop.f32.mrf.mxu0  ;;  %v543_v60 = vadd.f32 %v897_v34, %v542_v58  ;;  %v464_v62 = vpop.f32.mrf.mxu1 }
  0xe9   : > { %v425_v61 = vadd.f32 %v897_v34, %v424_v59  ;;  %v465_v63 = vadd.f32 %v897_v34, %v464_v62 }
  0xea   : > { %600 = vst.msk [vmem:[%s904_s27 + $0x150] sm:$0xff] %vm557_vm1, %v503_v57 }
  0xeb   : > { %616 = vst.msk [vmem:[%s904_s27 + $0x1d0] sm:$0xff] %vm557_vm1, %v543_v60 }
  0xec   : > { %569 = vst.msk [vmem:[%s904_s27 + $0x58] sm:$0xff] %vm557_vm1, %v425_v61 }
  0xed   : > { %585 = vst.msk [vmem:[%s904_s27 + $0xd8] sm:$0xff] %vm557_vm1, %v465_v63 }
  0xef   : > { %v504_v0 = vpop.f32.mrf.mxu2  ;;  %v544_v2 = vpop.f32.mrf.mxu3 }
  0xf0   : > { %v505_v1 = vadd.f32 %v897_v34, %v504_v0  ;;  %v427_v3 = vpop.f32.mrf.mxu0  ;;  %v545_v4 = vadd.f32 %v897_v34, %v544_v2  ;;  %v467_v6 = vpop.f32.mrf.mxu1 }
  0xf1   : > { %v428_v5 = vadd.f32 %v897_v34, %v427_v3  ;;  %v468_v7 = vadd.f32 %v897_v34, %v467_v6 }
  0xf2   : > { %601 = vst.msk [vmem:[%s904_s27 + $0x158] sm:$0xff] %vm557_vm1, %v505_v1 }
  0xf3   : > { %617 = vst.msk [vmem:[%s904_s27 + $0x1d8] sm:$0xff] %vm557_vm1, %v545_v4 }
  0xf4   : > { %570 = vst.msk [vmem:[%s904_s27 + $0x60] sm:$0xff] %vm557_vm1, %v428_v5 }
  0xf5   : > { %586 = vst.msk [vmem:[%s904_s27 + $0xe0] sm:$0xff] %vm557_vm1, %v468_v7 }
  0xf7   : > { %v507_v8 = vpop.f32.mrf.mxu2  ;;  %v547_v10 = vpop.f32.mrf.mxu3 }
  0xf8   : > { %v508_v9 = vadd.f32 %v897_v34, %v507_v8  ;;  %v429_v11 = vpop.f32.mrf.mxu0  ;;  %v548_v12 = vadd.f32 %v897_v34, %v547_v10  ;;  %v469_v14 = vpop.f32.mrf.mxu1 }
  0xf9   : > { %v430_v13 = vadd.f32 %v897_v34, %v429_v11  ;;  %v470_v15 = vadd.f32 %v897_v34, %v469_v14 }
  0xfa   : > { %602 = vst.msk [vmem:[%s904_s27 + $0x160] sm:$0xff] %vm557_vm1, %v508_v9 }
  0xfb   : > { %618 = vst.msk [vmem:[%s904_s27 + $0x1e0] sm:$0xff] %vm557_vm1, %v548_v12 }
  0xfc   : > { %571 = vst.msk [vmem:[%s904_s27 + $0x68] sm:$0xff] %vm557_vm1, %v430_v13 }
  0xfd   : > { %587 = vst.msk [vmem:[%s904_s27 + $0xe8] sm:$0xff] %vm557_vm1, %v470_v15 }
  0xff   : > { %v509_v16 = vpop.f32.mrf.mxu2  ;;  %v549_v18 = vpop.f32.mrf.mxu3 }
 0x100   : > { %v510_v17 = vadd.f32 %v897_v34, %v509_v16  ;;  %v432_v19 = vpop.f32.mrf.mxu0  ;;  %v550_v20 = vadd.f32 %v897_v34, %v549_v18  ;;  %v472_v22 = vpop.f32.mrf.mxu1 }
 0x101   : > { %v433_v21 = vadd.f32 %v897_v34, %v432_v19  ;;  %v473_v23 = vadd.f32 %v897_v34, %v472_v22 }
 0x102   : > { %603 = vst.msk [vmem:[%s904_s27 + $0x168] sm:$0xff] %vm557_vm1, %v510_v17 }
 0x103   : > { %619 = vst.msk [vmem:[%s904_s27 + $0x1e8] sm:$0xff] %vm557_vm1, %v550_v20 }
 0x104   : > { %572 = vst.msk [vmem:[%s904_s27 + $0x70] sm:$0xff] %vm557_vm1, %v433_v21 }
 0x105   : > { %588 = vst.msk [vmem:[%s904_s27 + $0xf0] sm:$0xff] %vm557_vm1, %v473_v23 }
 0x107   : > { %v512_v24 = vpop.f32.mrf.mxu2  ;;  %v552_v26 = vpop.f32.mrf.mxu3 }
 0x108   : > { %v513_v25 = vadd.f32 %v897_v34, %v512_v24  ;;  %v434_v27 = vpop.f32.mrf.mxu0  ;;  %v553_v28 = vadd.f32 %v897_v34, %v552_v26  ;;  %v474_v30 = vpop.f32.mrf.mxu1 }
 0x109   : > { %v435_v29 = vadd.f32 %v897_v34, %v434_v27  ;;  %v475_v31 = vadd.f32 %v897_v34, %v474_v30 }
 0x10a   : > { %604 = vst.msk [vmem:[%s904_s27 + $0x170] sm:$0xff] %vm557_vm1, %v513_v25 }
 0x10b   : > { %620 = vst.msk [vmem:[%s904_s27 + $0x1f0] sm:$0xff] %vm557_vm1, %v553_v28 }
 0x10c   : > { %573 = vst.msk [vmem:[%s904_s27 + $0x78] sm:$0xff] %vm557_vm1, %v435_v29 }
 0x10d   : > { %589 = vst.msk [vmem:[%s904_s27 + $0xf8] sm:$0xff] %vm557_vm1, %v475_v31 }
 0x10f   : > { %v514_v32 = vpop.f32.mrf.mxu2  ;;  %v554_v35 = vpop.f32.mrf.mxu3 }
 0x110   : > { %v515_v33 = vadd.f32 %v897_v34, %v514_v32  ;;  %v555_v36 = vadd.f32 %v897_v34, %v554_v35 }
 0x112   : > { %605 = vst.msk [vmem:[%s904_s27 + $0x178] sm:$0xff] %vm557_vm1, %v515_v33 }
 0x113   : > { %621 = vst.msk [vmem:[%s904_s27 + $0x1f8] sm:$0xff] %vm557_vm1, %v555_v36 }
 0x114 PF: > { %s13_s12 = sadd.s32 1, %s752_s12  }
 0x115   : > { %p10_p4 = scmp.ge.s32.totalorder %s13_s12, 10  }
 0x117   :  { %12 = sbr.rel (!%p10_p4) target bundleno = 1 (0x1), region = 62 }

</bundles_post_ra>
